<compile_context>
chip_gen: v7x
topology: tpu7x:2x2x1
jax: 0.10.0
libtpu: 0.0.40
codegen_flags: <defaults>
</compile_context>

<pallas_src>
import functools

import jax
import jax.numpy as jnp
from jax.experimental import pallas as pl
from jax.experimental.pallas import tpu as pltpu


def _physics_kernel(f_ref, je_ref):
    """Per-batch 3x3 determinant -> cube root.

    f_ref:  (9, TB) deformation gradients, component-major / batch on lanes.
    je_ref: (1, TB) Je = det(F) ** (1/3), batch on lanes.
    """
    f = f_ref[...]  # (9, TB) float32, dense vregs

    # Rows of the flattened 3x3 matrix (row-major: k = 3*r + c).
    a00 = f[0:1, :]
    a01 = f[1:2, :]
    a02 = f[2:3, :]
    a10 = f[3:4, :]
    a11 = f[4:5, :]
    a12 = f[5:6, :]
    a20 = f[6:7, :]
    a21 = f[7:8, :]
    a22 = f[8:9, :]

    # 3x3 determinant via cofactor expansion along the first row.  (1, TB)
    det = (a00 * (a11 * a22 - a12 * a21)
           - a01 * (a10 * a22 - a12 * a20)
           + a02 * (a10 * a21 - a11 * a20))

    # J^(1/3) — matches torch.pow semantics (NaN for negative J).  Single
    # dense store of the whole (1, TB) output block.
    je_ref[...] = jnp.power(det, jnp.float32(1.0 / 3.0))


@functools.partial(jax.jit, static_argnames=("block_b",))
def physics_forward(F: jax.Array, *, block_b: int = 65536) -> jax.Array:
    """F: (B, 3, 3) -> F_corrected: (B, 3, 3) (diagonal, Je on the diagonal)."""
    assert F.shape[1:] == (3, 3)
    assert block_b % 128 == 0, "block_b must be a multiple of 128 (lane width)"
    B = F.shape[0]
    out_dtype = F.dtype

    # Lane-dense layout: (9, B) with batch on the lane axis.  With
    # allow_input_fusion this transpose (and the pad below) is fused into the
    # Pallas input instead of being a separate HBM pass.
    f_t = jnp.transpose(F.reshape(B, 9).astype(jnp.float32))  # (9, B)

    # Adaptive tiling: pad the batch only to a multiple of 128 per tile
    # (waste <= 128 lanes/tile instead of up to ~2x), and keep >= 2 tiles when
    # there is enough work so both v7x TensorCores get a block.
    b128 = pl.cdiv(B, 128) * 128
    n_tiles = pl.cdiv(b128, block_b)
    if n_tiles == 1 and b128 >= 2048:
        n_tiles = 2
    tb = pl.cdiv(pl.cdiv(b128, n_tiles), 128) * 128
    b_pad = n_tiles * tb
    if b_pad != B:
        # Zero padding is benign: det(0) = 0 -> Je = 0, and it is sliced off.
        f_t = jnp.pad(f_t, ((0, 0), (0, b_pad - B)))

    je = pl.pallas_call(
        _physics_kernel,
        out_shape=jax.ShapeDtypeStruct((1, b_pad), jnp.float32),
        grid=(n_tiles,),
        in_specs=[pl.BlockSpec((9, tb), lambda i: (0, i))],
        out_specs=pl.BlockSpec((1, tb), lambda i: (0, i)),
        compiler_params=pltpu.CompilerParams(
            dimension_semantics=("parallel",),
            allow_input_fusion=[True],
            vmem_limit_bytes=32 * 1024 * 1024,
        ),
    )(f_t)

    je = je[0, :B]  # (B,)

    # diag_embed: cheap consumer-side broadcast, fused by XLA into one pass
    # (reads 4 B/elem, writes the unavoidable 36 B/elem output).
    eye = jnp.eye(3, dtype=jnp.float32)
    return (je[:, None, None] * eye).astype(out_dtype)


def _reference(F: jax.Array) -> jax.Array:
    """Pure-JAX reference mirroring the PyTorch forward."""
    J = jnp.linalg.det(F)
    Je_1_3 = jnp.power(J, 1.0 / 3.0)
    sigma = jnp.broadcast_to(Je_1_3[:, None], (F.shape[0], 3))
    return jax.vmap(jnp.diag)(sigma)


if __name__ == "__main__":
    key = jax.random.PRNGKey(0)

    # Small case (B not a multiple of 128 -> exercises lane padding).
    B = 16
    F = jnp.eye(3, dtype=jnp.float32)[None] + 0.1 * jax.random.normal(
        key, (B, 3, 3), dtype=jnp.float32)
    out = physics_forward(F)
    jax.block_until_ready(out)
    ref = _reference(F)
    assert out.shape == (B, 3, 3)
    assert jnp.allclose(out, ref, atol=1e-5, rtol=1e-5), "mismatch vs reference"

    # Multi-tile case (forces grid > 1 plus edge padding with block_b=128).
    B2 = 300
    F2 = jnp.eye(3, dtype=jnp.float32)[None] + 0.05 * jax.random.normal(
        jax.random.PRNGKey(1), (B2, 3, 3), dtype=jnp.float32)
    out2 = physics_forward(F2, block_b=128)
    jax.block_until_ready(out2)
    ref2 = _reference(F2)
    assert out2.shape == (B2, 3, 3)
    assert jnp.allclose(out2, ref2, atol=1e-5, rtol=1e-5), \
        "mismatch vs reference (multi-tile)"

    print("KERNEL_OK")
</pallas_src>

<mosaic_0001>
module attributes {stable_mosaic.version = 11 : i64} {
  func.func @_physics_kernel(%arg0: i32, %arg1: memref<9x128xf32, #tpu.memory_space<vmem>>, %arg2: memref<1x128xf32, #tpu.memory_space<vmem>>) attributes {dimension_semantics = [#tpu.dimension_semantics<parallel>], iteration_bounds = array<i64: 1>, scalar_prefetch = 0 : i64, scratch_operands = 0 : i64, tpu.core_type = #tpu.core_type<tc>, window_params = [{transform_indices = @transform_0, window_bounds = array<i64: 9, 128>}, {transform_indices = @transform_1, window_bounds = array<i64: 1, 128>}]} {
    %c0 = arith.constant 0 : index
    %c0_0 = arith.constant 0 : index
    %0 = vector.load %arg1[%c0, %c0_0] : memref<9x128xf32, #tpu.memory_space<vmem>>, vector<9x128xf32>
    %1 = vector.extract_strided_slice %0 {offsets = [0, 0], sizes = [1, 128], strides = [1, 1]} : vector<9x128xf32> to vector<1x128xf32>
    %2 = vector.extract_strided_slice %0 {offsets = [1, 0], sizes = [1, 128], strides = [1, 1]} : vector<9x128xf32> to vector<1x128xf32>
    %3 = vector.extract_strided_slice %0 {offsets = [2, 0], sizes = [1, 128], strides = [1, 1]} : vector<9x128xf32> to vector<1x128xf32>
    %4 = vector.extract_strided_slice %0 {offsets = [3, 0], sizes = [1, 128], strides = [1, 1]} : vector<9x128xf32> to vector<1x128xf32>
    %5 = vector.extract_strided_slice %0 {offsets = [4, 0], sizes = [1, 128], strides = [1, 1]} : vector<9x128xf32> to vector<1x128xf32>
    %6 = vector.extract_strided_slice %0 {offsets = [5, 0], sizes = [1, 128], strides = [1, 1]} : vector<9x128xf32> to vector<1x128xf32>
    %7 = vector.extract_strided_slice %0 {offsets = [6, 0], sizes = [1, 128], strides = [1, 1]} : vector<9x128xf32> to vector<1x128xf32>
    %8 = vector.extract_strided_slice %0 {offsets = [7, 0], sizes = [1, 128], strides = [1, 1]} : vector<9x128xf32> to vector<1x128xf32>
    %9 = vector.extract_strided_slice %0 {offsets = [8, 0], sizes = [1, 128], strides = [1, 1]} : vector<9x128xf32> to vector<1x128xf32>
    %10 = arith.mulf %5, %9 : vector<1x128xf32>
    %11 = arith.mulf %6, %8 : vector<1x128xf32>
    %12 = arith.subf %10, %11 : vector<1x128xf32>
    %13 = arith.mulf %1, %12 : vector<1x128xf32>
    %14 = arith.mulf %4, %9 : vector<1x128xf32>
    %15 = arith.mulf %6, %7 : vector<1x128xf32>
    %16 = arith.subf %14, %15 : vector<1x128xf32>
    %17 = arith.mulf %2, %16 : vector<1x128xf32>
    %18 = arith.subf %13, %17 : vector<1x128xf32>
    %19 = arith.mulf %4, %8 : vector<1x128xf32>
    %20 = arith.mulf %5, %7 : vector<1x128xf32>
    %21 = arith.subf %19, %20 : vector<1x128xf32>
    %22 = arith.mulf %3, %21 : vector<1x128xf32>
    %23 = arith.addf %18, %22 : vector<1x128xf32>
    %cst = arith.constant 0.333333343 : f32
    %24 = vector.broadcast %cst : f32 to vector<1x128xf32>
    %25 = math.powf %23, %24 : vector<1x128xf32>
    %c0_1 = arith.constant 0 : index
    %c0_2 = arith.constant 0 : index
    %26 = vector.load %arg2[%c0_1, %c0_2] : memref<1x128xf32, #tpu.memory_space<vmem>>, vector<1x128xf32>
    tpu.vector_store %arg2[%c0_1, %c0_2], %25 {strides = array<i32>} : memref<1x128xf32, #tpu.memory_space<vmem>>, vector<1x128xf32>,
    return
  }
  func.func @transform_0(%arg0: i32) -> (i32, i32) {
    %c0_i32 = arith.constant 0 : i32
    %c0_i32_0 = arith.constant 0 : i32
    return %c0_i32, %arg0 : i32, i32
  }
  func.func @transform_1(%arg0: i32) -> (i32, i32) {
    %c0_i32 = arith.constant 0 : i32
    %c0_i32_0 = arith.constant 0 : i32
    return %c0_i32, %arg0 : i32, i32
  }
}

</mosaic_0001>

<bundles_post_ra>
// kernel: physics_forward.2
= control target key start
LH: loop header
LB: loop body
LE: loop exit
PB: predicated region body
PF: predicated region fallthrough
CT: control target
= control target key end

     0   :  { %s142_s0 = inlined_call_operand.vmem [shape: f32[9,16], index: 0, kind: input, shape index: {}]   ;;  %s143_s1 = inlined_call_operand.<no memory space> [shape: f32[], index: 1, kind: input, shape index: {}]   ;;  %s144_s2 = inlined_call_operand.vmem [shape: f32[1,128], index: 2, kind: output, shape index: {}]  }
   0x1   :  { %v7_v0 = vstv %s143_s1 }
   0x2   :  { %v16_v1 = vlaneseq  ;;  %v10_v2 = vld [vmem:[%s142_s0] sm:$0xff]  ;;  %v92_v5 = vld [vmem:[%s142_s0 + $0x8] sm:$0xff] }
   0x4   :  { %v17_v3 = vand.u32 127, %v16_v1  ;;  %v26_v4 = vshrl.u32 %v16_v1, 7 }
   0x6   :  { %vm19_vm0 = vcmp.lt.s32.totalorder %v17_v3, 16  ;;  %v27_v6 = vadd.s32 8, %v26_v4 }
   0x7   :  { %v20_v7 = vsel %vm19_vm0, %v10_v2, %v7_v0 }
   0x8   :  { %vm28_vm1 = vcmp.lt.s32.totalorder %v27_v6, 9  ;;  %v45_v8 = vrot.slane %v20_v7, 2  ;;  %v74_v10 = vrot.slane %v20_v7, 4  ;;  %v59_v13 = vrot.slane %v20_v7, 1 }
   0x9   :  { %v29_v9 = vsel %vm28_vm1, %v92_v5, %v7_v0 }
   0xa   :  { %v34_v11 = vsel %vm19_vm0, %v29_v9, %v7_v0  ;;  %v47_v12 = vmul.f32 %v45_v8, %v20_v7  ;;  %v76_v15 = vmul.f32 %v74_v10, %v20_v7  ;;  %v61_v16 = vmul.f32 %v59_v13, %v20_v7 }
   0xb   :  { %37 = vst [vmem:[#allocation7 + $0x8] sm:$0xff] %v34_v11 }
   0xc   :  { %v49_v14 = vrot.slane %v47_v12, 1  ;;  %v63_v21 = vrot.slane %v61_v16, 2 }
   0xe   :  { %v77_v17 = vsub.f32 %v76_v15, %v49_v14 }
  0x10   :  { %v79_v24 = vrot.slane %v77_v17, 1 }
  0x12   :  { %v39_v18 = vld [vmem:[#allocation7 + $0x8] sm:$0x1]  ;;  %v81_v29 = vmul.f32 %v79_v24, %v20_v7 }
  0x13   :  { %v41_v19 = vrot.slane %v39_v18, 4  ;;  %v56_v20 = vrot.slane %v39_v18, 5 }
  0x14   :  { %v83_v33 = vrot.slane %v81_v29, 2 }
  0x15   :  { %v43_v22 = vmul.f32 %v41_v19, %v20_v7  ;;  %v58_v23 = vmul.f32 %v56_v20, %v20_v7 }
  0x17   :  { %v51_v25 = vsub.f32 %v43_v22, %v49_v14  ;;  %v65_v26 = vsub.f32 %v58_v23, %v63_v21 }
  0x19   :  { %v53_v27 = vrot.slane %v51_v25, 4  ;;  %v67_v28 = vrot.slane %v65_v26, 2 }
  0x1b   :  { %v55_v30 = vmul.f32 %v53_v27, %v20_v7  ;;  %v69_v31 = vmul.f32 %v67_v28, %v20_v7 }
  0x1d   :  { %v71_v32 = vrot.slane %v69_v31, 1 }
  0x1f   :  { %v73_v34 = vsub.f32 %v55_v30, %v71_v32 }
  0x21   :  { %v85_v35 = vadd.f32 %v83_v33, %v73_v34 }
  0x23   :  { %v95_v36 = vand.u32 2147483647, %v85_v35  ;;  %v99_v39 = vand.u32 2147483648, %v85_v35  ;;  %vm94_vm4 = vcmp.lt.f32.partialorder %v85_v35, 0.0  ;;  %vm93_vm5 = vcmp.eq.f32.partialorder %v85_v35, 0.0 }
  0x25   :  { %111 = vlog2.f32 %v95_v36  ;;  %vm103_vm2 = vweird.f32 %v95_v36  ;;  %vm105_vm3 = vcmp.eq.f32.partialorder %v95_v36, 0.0  ;;  %vm96_vm6 = vcmp.eq.f32.partialorder %v95_v36, inf }
  0x2f   :  { %v112_v37 = vpop.eup %111 }
  0x30   :  { %v100_v38 = vmul.f32 0.33333334, %v112_v37 }
  0x32   :  { %113 = vpow2.f32 %v100_v38 }
  0x3c   :  { %v114_v40 = vpop.eup %113 }
  0x3d   :  { %v102_v41 = vor.u32 %v114_v40, %v99_v39 }
  0x3f   :  { %v104_v42 = vsel %vm103_vm2, %v85_v35, %v102_v41 }
  0x40   :  { %v107_v43 = vsel %vm105_vm3, %v99_v39, %v104_v42 }
  0x41   :  { %v108_v44 = vsel %vm94_vm4, nan, %v107_v43 }
  0x42   :  { %v109_v45 = vsel %vm93_vm5, 0.0, %v108_v44 }
  0x43   :  { %v110_v46 = vsel %vm96_vm6, inf, %v109_v45 }
  0x44   :  { %87 = vst [vmem:[%s144_s2] sm:$0x1] %v110_v46 }

</bundles_post_ra>
